<compile_context>
chip_gen: v7x
topology: tpu7x:2x2x1
jax: 0.10.0
libtpu: 0.0.40
codegen_flags: <defaults>
</compile_context>

<pallas_src>
import functools

import jax
import jax.numpy as jnp
from jax.experimental import pallas as pl
from jax.experimental.pallas import tpu as pltpu


def _rmsnorm_kernel(x_ref, w_ref, o_ref, *, eps, inv_h):
    # x_ref: (tile_rows, H), w_ref: (1, H), o_ref: (tile_rows, H)
    x_in = x_ref[...]
    x = x_in.astype(jnp.float32)                              # .to(float32)
    # sum * (1/H) instead of mean: XLU cross-lane sum + one VPU scale; the
    # 1/H is a trace-time constant.
    var = jnp.sum(x * x, axis=-1, keepdims=True) * inv_h      # pow(2).mean(-1)
    inv = jax.lax.rsqrt(var + eps)                            # rsqrt(var + eps)  (EUP)
    normed = (x * inv).astype(x_in.dtype)                     # .to(input_dtype)
    # If the wrapper pre-cast the weight to x.dtype this multiply stays in the
    # activation dtype; with an f32 weight it promotes to f32 (torch rule).
    o_ref[...] = (w_ref[...] * normed).astype(o_ref.dtype)    # weight * hidden_states


def _num_tensorcores():
    """Best-effort TensorCore count per chip (for the grid-step floor)."""
    try:
        kind = jax.devices()[0].device_kind.lower()
        if ("v7" in kind) or ("v4" in kind) or ("v5p" in kind):
            return 2
    except Exception:
        pass
    return 1


def _vmem_config():
    """Generation-aware (budget, limit) in bytes. Safe defaults for v7x."""
    budget = 24 * 1024 * 1024
    limit = 48 * 1024 * 1024
    try:
        cap = pltpu.get_tpu_info().vmem_capacity_bytes
        if cap >= 100 * 1024 * 1024:          # v5e / v6e: 128 MiB physical
            budget = 48 * 1024 * 1024
            limit = 96 * 1024 * 1024
    except Exception:
        pass
    return budget, limit


def _auto_tile_rows(R, H, in_dtype, out_dtype, vmem_budget, num_cores):
    """Largest row tile that fits the VMEM budget, aligned to sublane packing."""
    in_b = jnp.dtype(in_dtype).itemsize
    out_b = jnp.dtype(out_dtype).itemsize
    # Sublane packing factor: 8 rows/vreg at 32-bit, 16 at 16-bit, 32 at 8-bit.
    pack = 8 * max(1, 4 // max(in_b, 1))

    # Per-row VMEM: double-buffered input + output tiles + ~one f32 strip of
    # fused temporaries (tightened from the previous double-counted 8 B/elem).
    bytes_per_row = H * (2 * in_b + 2 * out_b + 4)
    t = vmem_budget // max(bytes_per_row, 1)
    t = max(pack, (t // pack) * pack)

    # Per-buffer byte target (~4 MiB input tile) instead of a hard row cap,
    # so small-H models still reach the >=1 MiB roofline sweet spot.
    rows_target = max(pack, ((4 << 20) // max(H * in_b, 1) // pack) * pack)
    t = min(t, rows_target)

    # Generation-aware step floor: keep >= 2 grid steps per TensorCore so the
    # DMA pipeline (and both v7x TCs) stay busy — but never shrink the input
    # tile below a ~1 MiB strip just to manufacture steps.
    min_steps = 2 * num_cores
    rows_floor = max(pack, ((1 << 20) // max(H * in_b, 1) // pack) * pack)
    if R > min_steps * rows_floor:
        rows_per_step = -(-R // min_steps)                    # ceil
        cap = max(rows_floor, -(-rows_per_step // pack) * pack)
        t = min(t, cap)

    # No point exceeding the whole (pack-rounded-up) problem.
    t = min(t, max(pack, -(-R // pack) * pack))
    return int(t)


def rmsnorm(x, weight, eps=1e-6, *, tile_rows=None, out_dtype=None):
    """RMSNorm over the last axis of x. x: (..., H), weight: (H,).

    out_dtype defaults to x.dtype (fast path: halves writeback bytes for bf16
    activations). For bit-exact torch promotion (f32 weight * bf16 input ->
    f32 output) pass out_dtype=jnp.result_type(weight.dtype, x.dtype).
    """
    orig_shape = x.shape
    H = orig_shape[-1]
    x2 = x.reshape(-1, H)
    R = x2.shape[0]

    if out_dtype is None:
        out_dtype = x2.dtype
    out_dtype = jnp.dtype(out_dtype)

    w2 = weight.reshape(1, H)
    if out_dtype == jnp.dtype(x2.dtype):
        # Fast path: do the final scale in the activation/output dtype.
        w2 = w2.astype(out_dtype)

    num_cores = _num_tensorcores()
    vmem_budget, vmem_limit = _vmem_config()
    if tile_rows is None:
        tile_rows = _auto_tile_rows(R, H, x2.dtype, out_dtype, vmem_budget, num_cores)

    grid_rows = pl.cdiv(R, tile_rows)  # no wrapper padding; tail block masked by Pallas

    kernel = functools.partial(_rmsnorm_kernel, eps=float(eps), inv_h=1.0 / H)
    out = pl.pallas_call(
        kernel,
        out_shape=jax.ShapeDtypeStruct((R, H), out_dtype),
        grid_spec=pltpu.PrefetchScalarGridSpec(
            num_scalar_prefetch=0,
            grid=(grid_rows,),
            in_specs=[
                # Only the row axis is blocked; H stays full-width (lane dense).
                pl.BlockSpec((tile_rows, H), lambda i: (i, 0)),
                # Constant block index -> Pallas skips re-DMA of the weight.
                pl.BlockSpec((1, H), lambda i: (0, 0)),
            ],
            out_specs=pl.BlockSpec((tile_rows, H), lambda i: (i, 0)),
        ),
        compiler_params=pltpu.CompilerParams(
            # Row axis is fully independent -> shard across TensorCores.
            dimension_semantics=("parallel",),
            vmem_limit_bytes=vmem_limit,
        ),
    )(x2, w2)

    return out.reshape(orig_shape[:-1] + (H,))


def rmsnorm_reference(x, weight, eps=1e-6):
    input_dtype = x.dtype
    xf = x.astype(jnp.float32)
    var = jnp.mean(xf * xf, axis=-1, keepdims=True)
    xf = xf * jax.lax.rsqrt(var + eps)
    return weight * xf.astype(input_dtype)


if __name__ == "__main__":
    key = jax.random.PRNGKey(0)
    k1, k2 = jax.random.split(key)

    # Small but lane-dense shape (hidden is a multiple of 128), f32.
    batch, seq, hidden = 2, 8, 256
    x = jax.random.normal(k1, (batch, seq, hidden), dtype=jnp.float32)
    # Deterministic parameter init (matches nn.Parameter(torch.ones(hidden_size))).
    weight = jnp.ones((hidden,), dtype=jnp.float32)

    out = jax.block_until_ready(rmsnorm(x, weight, eps=1e-6))
    ref = rmsnorm_reference(x, weight, eps=1e-6)
    assert out.shape == x.shape, (out.shape, x.shape)
    assert out.dtype == ref.dtype, (out.dtype, ref.dtype)
    assert jnp.allclose(out, ref, atol=1e-5, rtol=1e-5), "f32 mismatch vs reference"

    # bf16 activations with a row count that is NOT a multiple of the tile:
    # exercises the masked tail block.  Default path writes bf16 output
    # (bandwidth fast path); explicit out_dtype reproduces torch promotion.
    xb = jax.random.normal(k2, (3, 5, hidden), dtype=jnp.bfloat16)
    refb = rmsnorm_reference(xb, weight, eps=1e-6)          # f32 (torch promotion)

    outb_fast = jax.block_until_ready(rmsnorm(xb, weight, eps=1e-6))
    assert outb_fast.shape == xb.shape and outb_fast.dtype == xb.dtype
    assert jnp.allclose(outb_fast.astype(jnp.float32), refb.astype(jnp.float32),
                        atol=2e-2, rtol=2e-2), "bf16 fast-path mismatch vs reference"

    outb_torch = jax.block_until_ready(
        rmsnorm(xb, weight, eps=1e-6,
                out_dtype=jnp.result_type(weight.dtype, xb.dtype)))
    assert outb_torch.shape == xb.shape and outb_torch.dtype == refb.dtype
    assert jnp.allclose(outb_torch, refb, atol=2e-2, rtol=2e-2), \
        "bf16 torch-promotion mismatch vs reference"

    print("KERNEL_OK")
</pallas_src>

<mosaic_0001>
module attributes {stable_mosaic.version = 11 : i64} {
  func.func @_rmsnorm_kernel(%arg0: i32, %arg1: memref<16x256xf32, #tpu.memory_space<vmem>>, %arg2: memref<1x256xf32, #tpu.memory_space<vmem>>, %arg3: memref<16x256xf32, #tpu.memory_space<vmem>>) attributes {dimension_semantics = [#tpu.dimension_semantics<parallel>], iteration_bounds = array<i64: 1>, scalar_prefetch = 0 : i64, scratch_operands = 0 : i64, tpu.core_type = #tpu.core_type<tc>, window_params = [{transform_indices = @transform_0, window_bounds = array<i64: 16, 256>}, {pipeline_mode = #tpu.pipeline_mode<synchronous>, transform_indices = @transform_1, window_bounds = array<i64: 1, 256>}, {transform_indices = @transform_2, window_bounds = array<i64: 16, 256>}]} {
    %c0 = arith.constant 0 : index
    %c0_0 = arith.constant 0 : index
    %0 = vector.load %arg1[%c0, %c0_0] : memref<16x256xf32, #tpu.memory_space<vmem>>, vector<16x256xf32>
    %1 = arith.mulf %0, %0 : vector<16x256xf32>
    %cst = arith.constant dense<0.000000e+00> : vector<16xf32>
    %2 = vector.multi_reduction <add>, %1, %cst [1] : vector<16x256xf32> to vector<16xf32>
    %3 = vector.shape_cast %2 : vector<16xf32> to vector<16x1xf32>
    %cst_1 = arith.constant 3.906250e-03 : f32
    %4 = vector.broadcast %cst_1 : f32 to vector<16x1xf32>
    %5 = arith.mulf %3, %4 : vector<16x1xf32>
    %cst_2 = arith.constant 9.99999997E-7 : f32
    %6 = vector.broadcast %cst_2 : f32 to vector<16x1xf32>
    %7 = arith.addf %5, %6 : vector<16x1xf32>
    %8 = math.rsqrt %7 : vector<16x1xf32>
    %9 = vector.broadcast %8 : vector<16x1xf32> to vector<16x256xf32>
    %10 = arith.mulf %0, %9 : vector<16x256xf32>
    %c0_3 = arith.constant 0 : index
    %c0_4 = arith.constant 0 : index
    %11 = vector.load %arg2[%c0_3, %c0_4] : memref<1x256xf32, #tpu.memory_space<vmem>>, vector<1x256xf32>
    %12 = vector.broadcast %11 : vector<1x256xf32> to vector<16x256xf32>
    %13 = arith.mulf %12, %10 : vector<16x256xf32>
    %c0_5 = arith.constant 0 : index
    %c0_6 = arith.constant 0 : index
    %14 = vector.load %arg3[%c0_5, %c0_6] : memref<16x256xf32, #tpu.memory_space<vmem>>, vector<16x256xf32>
    tpu.vector_store %arg3[%c0_5, %c0_6], %13 {strides = array<i32>} : memref<16x256xf32, #tpu.memory_space<vmem>>, vector<16x256xf32>,
    return
  }
  func.func @transform_0(%arg0: i32) -> (i32, i32) {
    %c0_i32 = arith.constant 0 : i32
    %c0_i32_0 = arith.constant 0 : i32
    return %arg0, %c0_i32 : i32, i32
  }
  func.func @transform_1(%arg0: i32) -> (i32, i32) {
    %c0_i32 = arith.constant 0 : i32
    %c0_i32_0 = arith.constant 0 : i32
    %c0_i32_1 = arith.constant 0 : i32
    return %c0_i32, %c0_i32_0 : i32, i32
  }
  func.func @transform_2(%arg0: i32) -> (i32, i32) {
    %c0_i32 = arith.constant 0 : i32
    %c0_i32_0 = arith.constant 0 : i32
    return %arg0, %c0_i32 : i32, i32
  }
}

</mosaic_0001>

<bundles_post_ra>
// kernel: tpu_custom_call.1
= control target key start
LH: loop header
LB: loop body
LE: loop exit
PB: predicated region body
PF: predicated region fallthrough
CT: control target
= control target key end

     0   :  { %7 = vsyncpa [#allocation3], 0  ;;  %s195_s0 = inlined_call_operand.hbm [shape: f32[16,256], index: 0, kind: input, shape index: {}]   ;;  %s196_s1 = inlined_call_operand.vmem [shape: f32[1,256], index: 1, kind: input, shape index: {}]   ;;  %s197_s2 = inlined_call_operand.hbm [shape: f32[16,256], index: 2, kind: output, shape index: {}]  }
   0x1   :  { %8 = vsyncpa [#allocation4], 0  ;;  %s143_s9 = smov [#allocation2]   ;;  %s95_s13 = scalar_lea.hbm %s195_s0, 512 }
   0x2   :  { %s14_s10 = sshll.u32 %s143_s9, 4  ;;  %p96_p0 = scmp.ne.s32.totalorder %s195_s0, %s95_s13  ;;  %s15_s10 = int_to_ptr.vmem [resolvable:$true] %s14_s10 }
   0x3   :  { %p99_p1 = scmp.lt.u32.totalorder %s95_s13, %s195_s0 }
   0x5   :  { %p101_p2 = pnand %p99_p1, %p96_p0 }
   0x7   :  { %104 = shalt.err (!%p101_p2)
}
   0x8   :  { %s105_s18 = scalar_lea.vmem %s15_s10, 512  ;;  %p110_p4 = scmp.lt.s32.totalorder %s15_s10, %s15_s10 }
   0x9   :  { %p106_p3 = scmp.ne.s32.totalorder %s15_s10, %s105_s18  ;;  %p111_p5 = scmp.lt.s32.totalorder %s105_s18, %s105_s18 }
   0xb   :  { %p112_p6 = por %p111_p5, %p110_p4 }
   0xd   :  { %p113_p7 = pnand %p112_p6, %p106_p3 }
   0xf   :  { %116 = shalt.err (!%p113_p7)
}
  0x10   :  { %s144_s19 = smov 256   ;;  %s145_s20 = smov 16  }
  0x11   :  { %20 = dma.hbm_to_vmem [thread:$0]  %s195_s0, 512, %s15_s10, [#allocation3], %s144_s19, %s144_s19, %s145_s20  }
  0x12   :  { %139 = dma.done.wait [#allocation3], 512  }
  0x13   :  { %140 = vsyncadd [#allocation3], 4294966784  ;;  %v26_v0 = vld [vmem:[#allocation2] sm:$0xff]  ;;  %v27_v1 = vld [vmem:[#allocation2 + $0x8] sm:$0xff]  ;;  %v52_v12 = vlaneseq  ;;  %s146_s24 = smov [#allocation5]  }
  0x14   :  { %v28_v2 = vld [vmem:[#allocation2 + $0x10] sm:$0xff]  ;;  %v30_v3 = vmul.f32 %v26_v0, %v26_v0  ;;  %v31_v4 = vmul.f32 %v27_v1, %v27_v1  ;;  %v29_v5 = vld [vmem:[#allocation2 + $0x18] sm:$0xff]  ;;  %v50_v20 = vld [vmem:[%s196_s1] sm:$0x3]  ;;  %s75_s25 = sshll.u32 %s146_s24, 4  ;;  %s76_s25 = int_to_ptr.vmem [resolvable:$true] %s75_s25 }
  0x15   :  { %v32_v6 = vmul.f32 %v28_v2, %v28_v2  ;;  %v33_v7 = vmul.f32 %v29_v5, %v29_v5  ;;  %v53_v16 = vshrl.u32 %v52_v12, 7  ;;  %s117_s1 = scalar_lea.vmem %s76_s25, 512  ;;  %p122_p9 = scmp.lt.s32.totalorder %s76_s25, %s76_s25 }
  0x16   :  { %v34_v8 = vadd.f32 %v31_v4, %v30_v3  ;;  %p118_p8 = scmp.ne.s32.totalorder %s76_s25, %s117_s1  ;;  %p123_p10 = scmp.lt.s32.totalorder %s117_s1, %s117_s1 }
  0x17   :  { %v37_v9 = vadd.f32 %v33_v7, %v32_v6  ;;  %v54_v18 = vsub.s32 0, %v53_v16  ;;  %v58_v19 = vsub.s32 1, %v53_v16 }
  0x18   :  { %35 = vadd.xlane.f32.xlu0 %v34_v8  ;;  %p124_p11 = por %p123_p10, %p122_p9 }
  0x19   :  { %v55_v21 = vrot.slane %v50_v20, %v54_v18  ;;  %v59_v22 = vrot.slane %v50_v20, %v58_v19 }
  0x1a   :  { %p125_p12 = pnand %p124_p11, %p118_p8 }
  0x1c   :  { %38 = vadd.xlane.f32.xlu0 %v37_v9 }
  0xa5   :  { %v36_v10 = vpop.xlane.xlu0 %35 }
  0xa6   :  { %v40_v11 = vmul.f32 0.00390625, %v36_v10 }
  0xa8   :  { %v42_v13 = vadd.f32 1e-06, %v40_v11 }
  0xa9   :  { %v39_v14 = vpop.xlane.xlu0 %38 }
  0xaa   :  { %91 = vrsqrt.f32 %v42_v13  ;;  %v41_v15 = vmul.f32 0.00390625, %v39_v14 }
  0xac   :  { %v43_v17 = vadd.f32 1e-06, %v41_v15 }
  0xae   :  { %93 = vrsqrt.f32 %v43_v17 }
  0xb4   :  { %v92_v23 = vpop.eup %91 }
  0xb5   :  { %v46_v24 = vmul.f32 %v92_v23, %v26_v0  ;;  %v47_v25 = vmul.f32 %v92_v23, %v27_v1 }
  0xb7   :  { %v62_v26 = vmul.f32 %v55_v21, %v46_v24  ;;  %v63_v27 = vmul.f32 %v59_v22, %v47_v25 }
  0xb8   :  { %v94_v28 = vpop.eup %93 }
  0xb9   :  { %v48_v29 = vmul.f32 %v94_v28, %v28_v2  ;;  %v49_v30 = vmul.f32 %v94_v28, %v29_v5  ;;  %66 = vst [vmem:[#allocation5] sm:$0xff] %v62_v26  ;;  %67 = vst [vmem:[#allocation5 + $0x8] sm:$0xff] %v63_v27 }
  0xbb   :  { %v64_v31 = vmul.f32 %v55_v21, %v48_v29  ;;  %v65_v32 = vmul.f32 %v59_v22, %v49_v30 }
  0xbd   :  { %68 = vst [vmem:[#allocation5 + $0x10] sm:$0xff] %v64_v31  ;;  %69 = vst [vmem:[#allocation5 + $0x18] sm:$0xff] %v65_v32 }
  0xbe   :  { %128 = shalt.err (!%p125_p12)
}
  0xbf   :  { %s129_s28 = scalar_lea.hbm %s197_s2, 512 }
  0xc0   :  { %p130_p13 = scmp.ne.s32.totalorder %s197_s2, %s129_s28  ;;  %p133_p0 = scmp.lt.u32.totalorder %s129_s28, %s197_s2 }
  0xc2   :  { %p135_p1 = pnand %p133_p0, %p130_p13 }
  0xc4   :  { %138 = shalt.err (!%p135_p1)
}
  0xc5   :  { %81 = dma.vmem_to_hbm [thread:$0]  %s76_s25, 512, %s197_s2, [#allocation4], %s144_s19, %s144_s19, %s145_s20  }
  0xc6   :  { %141 = dma.done.wait [#allocation4], 512  }
  0xc7   :  { %142 = vsyncadd [#allocation4], 4294966784 }
  0xc8   :  { %85 = vsyncpa [#allocation3], 1 }
  0xc9   :  { %86 = vsyncpa [#allocation4], 1 }

</bundles_post_ra>
